<compile_context>
chip_gen: v7x
topology: tpu7x:2x2x1
jax: 0.10.0
libtpu: 0.0.40
codegen_flags: <defaults>
</compile_context>

<pallas_src>
import functools
import math

import jax
import jax.numpy as jnp
from jax.experimental import pallas as pl
from jax.experimental.pallas import tpu as pltpu


# --------------------------------------------------------------------------- #
# Kernel
# --------------------------------------------------------------------------- #
def actor_kernel(obs_ref, w1_ref, b1_ref, w2_ref, b2_ref,
                 whead_ref, bhead_ref, eps_ref, out_ref,
                 *, act_dim: int, a_pad: int, pnorm: bool):
    LOG_STD_MIN, LOG_STD_MAX = -20.0, 2.0
    NEG_SLOPE = 0.01  # torch.nn.LeakyReLU default
    w_dtype = w1_ref.dtype  # GEMM input dtype (f32 or bf16); accumulation is f32

    obs = obs_ref[...]

    # phi = Sequential(Linear, LeakyReLU, Linear, LeakyReLU)
    h = jnp.dot(obs.astype(w_dtype), w1_ref[...],
                preferred_element_type=jnp.float32) + b1_ref[...]
    h = jnp.maximum(h, NEG_SLOPE * h)          # LeakyReLU, one VPU op / element
    h = jnp.dot(h.astype(w_dtype), w2_ref[...],
                preferred_element_type=jnp.float32) + b2_ref[...]
    h = jnp.maximum(h, NEG_SLOPE * h)

    if pnorm:
        # torch: phi / torch.norm(phi, dim=1).view(-1, 1).  rsqrt = single EUP op;
        # 1e-12 only guards the degenerate all-zero row (torch would emit NaN/Inf).
        h = h * jax.lax.rsqrt(jnp.sum(h * h, axis=1, keepdims=True) + 1e-12)

    # Fused, lane-padded mu/log_std head: mu occupies lanes [0, a_pad),
    # log_std lanes [a_pad, 2*a_pad).  Padded columns of whead/bhead are zero,
    # so padded lanes of `head` are exactly zero.
    head = jnp.dot(h.astype(w_dtype), whead_ref[...],
                   preferred_element_type=jnp.float32) + bhead_ref[...]
    mu = head[:, :a_pad]
    log_std = jnp.clip(head[:, a_pad:], LOG_STD_MIN, LOG_STD_MAX)

    # MultivariateNormal(mu, diag_embed(exp(log_std))): covariance = exp(log_std),
    # so the per-dim std used by rsample is exp(0.5 * log_std).
    std = jnp.exp(0.5 * log_std)
    eps = eps_ref[...]                          # zero in padded lanes / padded rows
    action_pre = mu + std * eps

    # diag-MVN log_prob: (x - mu)^2 / var == eps^2 exactly.  Padded lanes contribute
    # 0 to every reduction (eps = 0, log_std = clip(0) = 0, action_pre = 0).
    quad = jnp.sum(eps * eps, axis=1, keepdims=True)
    logdet = jnp.sum(log_std, axis=1, keepdims=True)
    lprob = -0.5 * (quad + logdet + act_dim * math.log(2.0 * math.pi))

    # tanh-squash correction: sum_i 2*(log 2 - a_i - softplus(-2 a_i)).
    corr = jnp.sum(
        2.0 * (math.log(2.0) - action_pre - jnp.logaddexp(0.0, -2.0 * action_pre)),
        axis=1, keepdims=True)
    lprob = lprob - corr

    action = jnp.tanh(action_pre)

    # Lane-aligned, unmasked stores (every offset/width is a multiple of 128).
    out_ref[:, 0 * a_pad:1 * a_pad] = action
    out_ref[:, 1 * a_pad:2 * a_pad] = mu
    out_ref[:, 2 * a_pad:3 * a_pad] = log_std
    out_ref[:, 3 * a_pad:4 * a_pad] = action_pre
    out_ref[:, 4 * a_pad:] = jnp.broadcast_to(
        lprob, (lprob.shape[0], out_ref.shape[1] - 4 * a_pad))


# --------------------------------------------------------------------------- #
# Wrapper helpers
# --------------------------------------------------------------------------- #
def _round_up(x: int, m: int) -> int:
    return ((x + m - 1) // m) * m


def _vmem_capacity_bytes() -> int:
    """Per-core VMEM capacity; conservative (v7x) default if the query fails."""
    try:
        info = pltpu.get_tpu_info()
        cap = getattr(info, "vmem_capacity_bytes", None)
        if cap:
            return int(cap)
    except Exception:
        pass
    return 64 * 1024 * 1024


def _pick_tile_b(batch, obs_dim, n_hid, a_pad, pack_w, w_itemsize, vmem_budget):
    """VMEM-aware batch tile, preferred in multiples of 128 (MXU M granularity)."""
    # Weights/biases, single-buffered (pl.Buffered(1) on the resident specs).
    weight_bytes = (w_itemsize * (obs_dim * n_hid + n_hid * n_hid + n_hid * 2 * a_pad)
                    + 4 * (2 * n_hid + 2 * a_pad))
    # Per-batch-row VMEM: double-buffered obs/eps/out tiles + ~6 live f32
    # (tile_b, n_hid) intermediates (h1, leaky, h2, leaky/pnorm, casts, staging).
    per_row = (2 * 4 * (obs_dim + a_pad + pack_w)
               + 6 * 4 * n_hid + 2 * w_itemsize * n_hid)
    avail = max(vmem_budget - weight_bytes, 2 * 1024 * 1024)
    cap = max(8, avail // max(per_row, 1))

    tile = 8
    for t in (512, 384, 256, 128, 64, 32, 16, 8):
        if t <= cap:
            tile = t
            break
    # Never tile beyond the (8-padded) batch itself.
    tile = min(tile, _round_up(max(batch, 1), 8))
    # v7x megacore: keep >= 2 grid steps when the batch is big enough to split.
    if batch >= 256:
        tile = min(tile, max(128, _round_up((batch + 1) // 2, 128)))
    return max(8, _round_up(tile, 8))


# --------------------------------------------------------------------------- #
# Forward
# --------------------------------------------------------------------------- #
def actor_forward(obs, params, eps, *, pnorm=False, use_bf16=None):
    """obs: (B, obs_dim) f32, eps: (B, action_dim) f32 standard-normal noise."""
    B, obs_dim = obs.shape
    n_hid = params["w1"].shape[1]
    A = params["wmu"].shape[1]
    A_pad = _round_up(max(A, 1), 128)          # action dim padded to 128 lanes
    pack_w = 4 * A_pad + 128                   # action|mu|log_std|action_pre|lprob

    # bf16 GEMM inputs (f32 accumulate).  Kept behind n_hid >= 512 by default so
    # the f32 path stays bit-faithful to the torch reference; small-batch
    # inference callers can force use_bf16=True (halves the HBM weight fetch).
    if use_bf16 is None:
        use_bf16 = n_hid >= 512
    w_dt = jnp.bfloat16 if use_bf16 else jnp.float32
    w_itemsize = jnp.dtype(w_dt).itemsize

    # Zero-padded fused head: mu -> lanes [0, A_pad), log_std -> [A_pad, 2*A_pad).
    whead = jnp.zeros((n_hid, 2 * A_pad), jnp.float32)
    whead = whead.at[:, :A].set(params["wmu"]).at[:, A_pad:A_pad + A].set(params["wls"])
    bhead = jnp.zeros((1, 2 * A_pad), jnp.float32)
    bhead = bhead.at[:, :A].set(params["bmu"]).at[:, A_pad:A_pad + A].set(params["bls"])

    w1 = params["w1"].astype(w_dt)
    w2 = params["w2"].astype(w_dt)
    whead = whead.astype(w_dt)
    b1, b2 = params["b1"], params["b2"]

    vmem_cap = _vmem_capacity_bytes()
    budget = int(0.85 * vmem_cap)              # generation-aware (128 MiB v5e/v6e, 64 MiB v7x)
    tile_b = _pick_tile_b(B, obs_dim, n_hid, A_pad, pack_w, w_itemsize, budget)
    B_pad = _round_up(B, tile_b)
    grid = (B_pad // tile_b,)

    # Batch padding (padded rows are finite and discarded in the wrapper).
    obs_p = jnp.pad(obs.astype(jnp.float32), ((0, B_pad - B), (0, 0)))
    eps_p = jnp.zeros((B_pad, A_pad), jnp.float32).at[:B, :A].set(eps.astype(jnp.float32))

    weight_bytes = (w_itemsize * (w1.size + w2.size + whead.size)
                    + 4 * (b1.size + b2.size + bhead.size))
    per_row = (2 * 4 * (obs_dim + A_pad + pack_w)
               + 6 * 4 * n_hid + 2 * w_itemsize * n_hid)
    est = 2 * weight_bytes + per_row * tile_b + 8 * 1024 * 1024
    vmem_limit = int(min(budget, max(32 * 1024 * 1024, est)))

    kernel = functools.partial(actor_kernel, act_dim=A, a_pad=A_pad, pnorm=pnorm)

    def _run(single_buffer_weights: bool):
        def _res(shape):
            # Resident weights/biases: constant index_map; single-buffer them so
            # large weights are not silently allocated twice in VMEM.
            if single_buffer_weights:
                return pl.BlockSpec(shape, lambda i: (0, 0),
                                    pipeline_mode=pl.Buffered(1))
            return pl.BlockSpec(shape, lambda i: (0, 0))

        grid_spec = pltpu.PrefetchScalarGridSpec(
            num_scalar_prefetch=0,
            grid=grid,
            in_specs=[
                pl.BlockSpec((tile_b, obs_dim), lambda i: (i, 0)),   # obs
                _res((obs_dim, n_hid)),                              # w1
                _res((1, n_hid)),                                    # b1
                _res((n_hid, n_hid)),                                # w2
                _res((1, n_hid)),                                    # b2
                _res((n_hid, 2 * A_pad)),                            # whead (mu|ls, padded)
                _res((1, 2 * A_pad)),                                # bhead
                pl.BlockSpec((tile_b, A_pad), lambda i: (i, 0)),     # eps (padded)
            ],
            out_specs=pl.BlockSpec((tile_b, pack_w), lambda i: (i, 0)),
        )
        return pl.pallas_call(
            kernel,
            out_shape=jax.ShapeDtypeStruct((B_pad, pack_w), jnp.float32),
            grid_spec=grid_spec,
            compiler_params=pltpu.CompilerParams(
                dimension_semantics=("parallel",),
                vmem_limit_bytes=vmem_limit,
            ),
        )(obs_p, w1, b1, w2, b2, whead, bhead, eps_p)

    try:
        packed = _run(True)
    except Exception:
        # pl.Buffered(1) (single-buffered resident weights) not supported on this
        # jax/Mosaic version -> fall back to default double-buffering.
        packed = _run(False)

    action = packed[:B, 0:A]
    mu = packed[:B, A_pad:A_pad + A]
    log_std = packed[:B, 2 * A_pad:2 * A_pad + A]
    action_pre = packed[:B, 3 * A_pad:3 * A_pad + A]
    lprob = packed[:B, 4 * A_pad]

    # TODO(synk): the torch `dist` object itself has no Pallas/JAX equivalent; its
    # defining statistics (mu, log_std) are returned instead.
    action_info = {
        "mu": mu,
        "log_std": log_std,
        "lprob": lprob,
        "action_pre": action_pre,
    }
    return action, action_info


# --------------------------------------------------------------------------- #
# Params + pure-JAX reference (for validation)
# --------------------------------------------------------------------------- #
def init_params(key, obs_dim, n_hid, action_dim):
    """Orthogonal init (mirrors orthogonal_weight_init); weights stored already
    transposed to (in, out) so the kernel does plain x @ W + b."""
    ks = jax.random.split(key, 4)
    ortho = jax.nn.initializers.orthogonal()
    return {
        "w1": ortho(ks[0], (obs_dim, n_hid), jnp.float32),
        "b1": jnp.zeros((1, n_hid), jnp.float32),
        "w2": ortho(ks[1], (n_hid, n_hid), jnp.float32),
        "b2": jnp.zeros((1, n_hid), jnp.float32),
        "wmu": ortho(ks[2], (n_hid, action_dim), jnp.float32),
        "bmu": jnp.zeros((1, action_dim), jnp.float32),
        "wls": ortho(ks[3], (n_hid, action_dim), jnp.float32),
        "bls": jnp.zeros((1, action_dim), jnp.float32),
    }


def _reference_forward(obs, params, eps, pnorm):
    """Pure-JAX mirror of the torch Actor.forward (eps = rsample noise)."""
    hp = jax.lax.Precision.HIGHEST
    h = jnp.dot(obs, params["w1"], precision=hp) + params["b1"]
    h = jnp.where(h > 0, h, 0.01 * h)
    h = jnp.dot(h, params["w2"], precision=hp) + params["b2"]
    h = jnp.where(h > 0, h, 0.01 * h)
    if pnorm:
        h = h / jnp.linalg.norm(h, axis=1, keepdims=True)
    mu = jnp.dot(h, params["wmu"], precision=hp) + params["bmu"]
    log_std = jnp.clip(jnp.dot(h, params["wls"], precision=hp) + params["bls"],
                       -20.0, 2.0)
    std = jnp.exp(0.5 * log_std)          # covariance = diag(exp(log_std))
    action_pre = mu + std * eps
    k = mu.shape[1]
    quad = jnp.sum((action_pre - mu) ** 2 / jnp.exp(log_std), axis=1)
    lprob = -0.5 * (quad + jnp.sum(log_std, axis=1) + k * math.log(2.0 * math.pi))
    lprob = lprob - jnp.sum(
        2.0 * (math.log(2.0) - action_pre - jax.nn.softplus(-2.0 * action_pre)),
        axis=1)
    return jnp.tanh(action_pre), mu, log_std, action_pre, lprob


# --------------------------------------------------------------------------- #
# Smoke test
# --------------------------------------------------------------------------- #
if __name__ == "__main__":
    B, OBS_DIM, N_HID, ACT_DIM = 8, 16, 32, 4
    PNORM = True

    root = jax.random.PRNGKey(0)
    k_param, k_obs, k_eps = jax.random.split(root, 3)

    params = init_params(k_param, OBS_DIM, N_HID, ACT_DIM)
    obs = jax.random.normal(k_obs, (B, OBS_DIM), dtype=jnp.float32)
    eps = jax.random.normal(k_eps, (B, ACT_DIM), dtype=jnp.float32)  # rsample noise

    action, info = actor_forward(obs, params, eps, pnorm=PNORM)
    jax.block_until_ready((action, info["lprob"]))

    # shape / sanity checks
    assert action.shape == (B, ACT_DIM)
    assert info["mu"].shape == (B, ACT_DIM)
    assert info["log_std"].shape == (B, ACT_DIM)
    assert info["action_pre"].shape == (B, ACT_DIM)
    assert info["lprob"].shape == (B,)
    assert bool(jnp.all(jnp.isfinite(action)))
    assert bool(jnp.all(jnp.isfinite(info["lprob"])))
    assert bool(jnp.all(jnp.abs(action) <= 1.0))
    assert bool(jnp.allclose(action, jnp.tanh(info["action_pre"]), atol=1e-5))

    # numerical check against a pure-JAX mirror of the torch forward
    r_act, r_mu, r_ls, r_ap, r_lp = _reference_forward(obs, params, eps, PNORM)
    assert bool(jnp.allclose(action, r_act, atol=2e-3, rtol=2e-3))
    assert bool(jnp.allclose(info["mu"], r_mu, atol=2e-3, rtol=2e-3))
    assert bool(jnp.allclose(info["log_std"], r_ls, atol=2e-3, rtol=2e-3))
    assert bool(jnp.allclose(info["action_pre"], r_ap, atol=2e-3, rtol=2e-3))
    assert bool(jnp.allclose(info["lprob"], r_lp, atol=5e-3, rtol=5e-3))

    # exercise the batch-padding path (B not a multiple of 8)
    obs2 = jax.random.normal(jax.random.PRNGKey(1), (10, OBS_DIM), dtype=jnp.float32)
    eps2 = jax.random.normal(jax.random.PRNGKey(2), (10, ACT_DIM), dtype=jnp.float32)
    a2, i2 = actor_forward(obs2, params, eps2, pnorm=PNORM)
    jax.block_until_ready(a2)
    assert a2.shape == (10, ACT_DIM) and i2["lprob"].shape == (10,)
    assert bool(jnp.all(jnp.isfinite(a2)))

    print("KERNEL_OK")
</pallas_src>

<mosaic_0001>
module attributes {stable_mosaic.version = 11 : i64} {
  func.func @actor_kernel(%arg0: i32, %arg1: memref<8x16xf32, #tpu.memory_space<vmem>>, %arg2: memref<16x32xf32, #tpu.memory_space<vmem>>, %arg3: memref<1x32xf32, #tpu.memory_space<vmem>>, %arg4: memref<32x32xf32, #tpu.memory_space<vmem>>, %arg5: memref<1x32xf32, #tpu.memory_space<vmem>>, %arg6: memref<32x256xf32, #tpu.memory_space<vmem>>, %arg7: memref<1x256xf32, #tpu.memory_space<vmem>>, %arg8: memref<8x128xf32, #tpu.memory_space<vmem>>, %arg9: memref<8x640xf32, #tpu.memory_space<vmem>>) attributes {dimension_semantics = [#tpu.dimension_semantics<parallel>], iteration_bounds = array<i64: 1>, scalar_prefetch = 0 : i64, scratch_operands = 0 : i64, tpu.core_type = #tpu.core_type<tc>, window_params = [{transform_indices = @transform_0, window_bounds = array<i64: 8, 16>}, {pipeline_mode = #tpu.pipeline_mode<synchronous>, transform_indices = @transform_1, window_bounds = array<i64: 16, 32>}, {pipeline_mode = #tpu.pipeline_mode<synchronous>, transform_indices = @transform_2, window_bounds = array<i64: 1, 32>}, {pipeline_mode = #tpu.pipeline_mode<synchronous>, transform_indices = @transform_3, window_bounds = array<i64: 32, 32>}, {pipeline_mode = #tpu.pipeline_mode<synchronous>, transform_indices = @transform_4, window_bounds = array<i64: 1, 32>}, {pipeline_mode = #tpu.pipeline_mode<synchronous>, transform_indices = @transform_5, window_bounds = array<i64: 32, 256>}, {pipeline_mode = #tpu.pipeline_mode<synchronous>, transform_indices = @transform_6, window_bounds = array<i64: 1, 256>}, {transform_indices = @transform_7, window_bounds = array<i64: 8, 128>}, {transform_indices = @transform_8, window_bounds = array<i64: 8, 640>}]} {
    %c0 = arith.constant 0 : index
    %c0_0 = arith.constant 0 : index
    %0 = vector.load %arg1[%c0, %c0_0] : memref<8x16xf32, #tpu.memory_space<vmem>>, vector<8x16xf32>
    %c0_1 = arith.constant 0 : index
    %c0_2 = arith.constant 0 : index
    %1 = vector.load %arg2[%c0_1, %c0_2] : memref<16x32xf32, #tpu.memory_space<vmem>>, vector<16x32xf32>
    %cst = arith.constant dense<0.000000e+00> : vector<8x32xf32>
    %2 = tpu.matmul %0, %1, %cst {dimension_numbers = #tpu.dot_dimension_numbers<[1], [0], [0], [1], [0, 0, 1, 1], [], []>} : vector<8x16xf32>, vector<16x32xf32>, vector<8x32xf32> -> vector<8x32xf32>
    %c0_3 = arith.constant 0 : index
    %c0_4 = arith.constant 0 : index
    %3 = vector.load %arg3[%c0_3, %c0_4] : memref<1x32xf32, #tpu.memory_space<vmem>>, vector<1x32xf32>
    %4 = vector.broadcast %3 : vector<1x32xf32> to vector<8x32xf32>
    %5 = arith.addf %2, %4 : vector<8x32xf32>
    %cst_5 = arith.constant 0.00999999977 : f32
    %6 = vector.broadcast %cst_5 : f32 to vector<8x32xf32>
    %7 = arith.mulf %6, %5 : vector<8x32xf32>
    %8 = arith.maximumf %5, %7 : vector<8x32xf32>
    %c0_6 = arith.constant 0 : index
    %c0_7 = arith.constant 0 : index
    %9 = vector.load %arg4[%c0_6, %c0_7] : memref<32x32xf32, #tpu.memory_space<vmem>>, vector<32x32xf32>
    %cst_8 = arith.constant dense<0.000000e+00> : vector<8x32xf32>
    %10 = tpu.matmul %8, %9, %cst_8 {dimension_numbers = #tpu.dot_dimension_numbers<[1], [0], [0], [1], [0, 0, 1, 1], [], []>} : vector<8x32xf32>, vector<32x32xf32>, vector<8x32xf32> -> vector<8x32xf32>
    %c0_9 = arith.constant 0 : index
    %c0_10 = arith.constant 0 : index
    %11 = vector.load %arg5[%c0_9, %c0_10] : memref<1x32xf32, #tpu.memory_space<vmem>>, vector<1x32xf32>
    %12 = vector.broadcast %11 : vector<1x32xf32> to vector<8x32xf32>
    %13 = arith.addf %10, %12 : vector<8x32xf32>
    %cst_11 = arith.constant 0.00999999977 : f32
    %14 = vector.broadcast %cst_11 : f32 to vector<8x32xf32>
    %15 = arith.mulf %14, %13 : vector<8x32xf32>
    %16 = arith.maximumf %13, %15 : vector<8x32xf32>
    %17 = arith.mulf %16, %16 : vector<8x32xf32>
    %cst_12 = arith.constant dense<0.000000e+00> : vector<8xf32>
    %18 = vector.multi_reduction <add>, %17, %cst_12 [1] : vector<8x32xf32> to vector<8xf32>
    %19 = vector.shape_cast %18 : vector<8xf32> to vector<8x1xf32>
    %cst_13 = arith.constant 9.99999996E-13 : f32
    %20 = vector.broadcast %cst_13 : f32 to vector<8x1xf32>
    %21 = arith.addf %19, %20 : vector<8x1xf32>
    %22 = math.rsqrt %21 : vector<8x1xf32>
    %23 = vector.broadcast %22 : vector<8x1xf32> to vector<8x32xf32>
    %24 = arith.mulf %16, %23 : vector<8x32xf32>
    %c0_14 = arith.constant 0 : index
    %c0_15 = arith.constant 0 : index
    %25 = vector.load %arg6[%c0_14, %c0_15] : memref<32x256xf32, #tpu.memory_space<vmem>>, vector<32x256xf32>
    %cst_16 = arith.constant dense<0.000000e+00> : vector<8x256xf32>
    %26 = tpu.matmul %24, %25, %cst_16 {dimension_numbers = #tpu.dot_dimension_numbers<[1], [0], [0], [1], [0, 0, 1, 1], [], []>} : vector<8x32xf32>, vector<32x256xf32>, vector<8x256xf32> -> vector<8x256xf32>
    %c0_17 = arith.constant 0 : index
    %c0_18 = arith.constant 0 : index
    %27 = vector.load %arg7[%c0_17, %c0_18] : memref<1x256xf32, #tpu.memory_space<vmem>>, vector<1x256xf32>
    %28 = vector.broadcast %27 : vector<1x256xf32> to vector<8x256xf32>
    %29 = arith.addf %26, %28 : vector<8x256xf32>
    %30 = vector.extract_strided_slice %29 {offsets = [0, 0], sizes = [8, 128], strides = [1, 1]} : vector<8x256xf32> to vector<8x128xf32>
    %31 = vector.extract_strided_slice %29 {offsets = [0, 128], sizes = [8, 128], strides = [1, 1]} : vector<8x256xf32> to vector<8x128xf32>
    %cst_19 = arith.constant -2.000000e+01 : f32
    %cst_20 = arith.constant 2.000000e+00 : f32
    %32 = vector.broadcast %cst_19 : f32 to vector<8x128xf32>
    %33 = arith.maximumf %32, %31 : vector<8x128xf32>
    %34 = vector.broadcast %cst_20 : f32 to vector<8x128xf32>
    %35 = arith.minimumf %34, %33 : vector<8x128xf32>
    %cst_21 = arith.constant 5.000000e-01 : f32
    %36 = vector.broadcast %cst_21 : f32 to vector<8x128xf32>
    %37 = arith.mulf %36, %35 : vector<8x128xf32>
    %38 = math.exp %37 : vector<8x128xf32>
    %c0_22 = arith.constant 0 : index
    %c0_23 = arith.constant 0 : index
    %39 = vector.load %arg8[%c0_22, %c0_23] : memref<8x128xf32, #tpu.memory_space<vmem>>, vector<8x128xf32>
    %40 = arith.mulf %38, %39 : vector<8x128xf32>
    %41 = arith.addf %30, %40 : vector<8x128xf32>
    %42 = arith.mulf %39, %39 : vector<8x128xf32>
    %cst_24 = arith.constant dense<0.000000e+00> : vector<8xf32>
    %43 = vector.multi_reduction <add>, %42, %cst_24 [1] : vector<8x128xf32> to vector<8xf32>
    %44 = vector.shape_cast %43 : vector<8xf32> to vector<8x1xf32>
    %cst_25 = arith.constant dense<0.000000e+00> : vector<8xf32>
    %45 = vector.multi_reduction <add>, %35, %cst_25 [1] : vector<8x128xf32> to vector<8xf32>
    %46 = vector.shape_cast %45 : vector<8xf32> to vector<8x1xf32>
    %47 = arith.addf %44, %46 : vector<8x1xf32>
    %cst_26 = arith.constant 7.35150814 : f32
    %48 = vector.broadcast %cst_26 : f32 to vector<8x1xf32>
    %49 = arith.addf %47, %48 : vector<8x1xf32>
    %cst_27 = arith.constant -5.000000e-01 : f32
    %50 = vector.broadcast %cst_27 : f32 to vector<8x1xf32>
    %51 = arith.mulf %50, %49 : vector<8x1xf32>
    %cst_28 = arith.constant 0.693147182 : f32
    %52 = vector.broadcast %cst_28 : f32 to vector<8x128xf32>
    %53 = arith.subf %52, %41 : vector<8x128xf32>
    %cst_29 = arith.constant -2.000000e+00 : f32
    %54 = vector.broadcast %cst_29 : f32 to vector<8x128xf32>
    %55 = arith.mulf %54, %41 : vector<8x128xf32>
    %cst_30 = arith.constant 0.000000e+00 : f32
    %56 = vector.broadcast %cst_30 : f32 to vector<8x128xf32>
    %57 = arith.maximumf %56, %55 : vector<8x128xf32>
    %58 = vector.broadcast %cst_30 : f32 to vector<8x128xf32>
    %59 = arith.subf %58, %55 : vector<8x128xf32>
    %60 = arith.cmpf one, %59, %59 : vector<8x128xf32>
    %61 = vector.broadcast %cst_30 : f32 to vector<8x128xf32>
    %62 = arith.addf %61, %55 : vector<8x128xf32>
    %63 = math.absf %59 : vector<8x128xf32>
    %cst_31 = arith.constant 0.000000e+00 : f32
    %64 = vector.broadcast %cst_31 : f32 to vector<8x128xf32>
    %65 = arith.subf %64, %63 : vector<8x128xf32>
    %66 = math.exp %65 : vector<8x128xf32>
    %67 = math.log1p %66 : vector<8x128xf32>
    %68 = arith.addf %57, %67 : vector<8x128xf32>
    %69 = arith.select %60, %62, %68 : vector<8x128xi1>, vector<8x128xf32>
    %70 = arith.subf %53, %69 : vector<8x128xf32>
    %cst_32 = arith.constant 2.000000e+00 : f32
    %71 = vector.broadcast %cst_32 : f32 to vector<8x128xf32>
    %72 = arith.mulf %71, %70 : vector<8x128xf32>
    %cst_33 = arith.constant dense<0.000000e+00> : vector<8xf32>
    %73 = vector.multi_reduction <add>, %72, %cst_33 [1] : vector<8x128xf32> to vector<8xf32>
    %74 = vector.shape_cast %73 : vector<8xf32> to vector<8x1xf32>
    %75 = arith.subf %51, %74 : vector<8x1xf32>
    %76 = math.tanh %41 : vector<8x128xf32>
    %c0_34 = arith.constant 0 : index
    %c0_35 = arith.constant 0 : index
    %77 = vector.load %arg9[%c0_34, %c0_35] : memref<8x640xf32, #tpu.memory_space<vmem>>, vector<8x128xf32>
    tpu.vector_store %arg9[%c0_34, %c0_35], %76 {strides = array<i32>} : memref<8x640xf32, #tpu.memory_space<vmem>>, vector<8x128xf32>,
    %c0_36 = arith.constant 0 : index
    %c128 = arith.constant 128 : index
    %78 = vector.load %arg9[%c0_36, %c128] : memref<8x640xf32, #tpu.memory_space<vmem>>, vector<8x128xf32>
    tpu.vector_store %arg9[%c0_36, %c128], %30 {strides = array<i32>} : memref<8x640xf32, #tpu.memory_space<vmem>>, vector<8x128xf32>,
    %c0_37 = arith.constant 0 : index
    %c256 = arith.constant 256 : index
    %79 = vector.load %arg9[%c0_37, %c256] : memref<8x640xf32, #tpu.memory_space<vmem>>, vector<8x128xf32>
    tpu.vector_store %arg9[%c0_37, %c256], %35 {strides = array<i32>} : memref<8x640xf32, #tpu.memory_space<vmem>>, vector<8x128xf32>,
    %c0_38 = arith.constant 0 : index
    %c384 = arith.constant 384 : index
    %80 = vector.load %arg9[%c0_38, %c384] : memref<8x640xf32, #tpu.memory_space<vmem>>, vector<8x128xf32>
    tpu.vector_store %arg9[%c0_38, %c384], %41 {strides = array<i32>} : memref<8x640xf32, #tpu.memory_space<vmem>>, vector<8x128xf32>,
    %81 = vector.shape_cast %75 : vector<8x1xf32> to vector<8x1xf32>
    %82 = vector.broadcast %81 : vector<8x1xf32> to vector<8x128xf32>
    %c0_39 = arith.constant 0 : index
    %c512 = arith.constant 512 : index
    %83 = vector.load %arg9[%c0_39, %c512] : memref<8x640xf32, #tpu.memory_space<vmem>>, vector<8x128xf32>
    tpu.vector_store %arg9[%c0_39, %c512], %82 {strides = array<i32>} : memref<8x640xf32, #tpu.memory_space<vmem>>, vector<8x128xf32>,
    return
  }
  func.func @transform_0(%arg0: i32) -> (i32, i32) {
    %c0_i32 = arith.constant 0 : i32
    %c0_i32_0 = arith.constant 0 : i32
    return %arg0, %c0_i32 : i32, i32
  }
  func.func @transform_1(%arg0: i32) -> (i32, i32) {
    %c0_i32 = arith.constant 0 : i32
    %c0_i32_0 = arith.constant 0 : i32
    %c0_i32_1 = arith.constant 0 : i32
    return %c0_i32, %c0_i32_0 : i32, i32
  }
  func.func @transform_2(%arg0: i32) -> (i32, i32) {
    %c0_i32 = arith.constant 0 : i32
    %c0_i32_0 = arith.constant 0 : i32
    %c0_i32_1 = arith.constant 0 : i32
    return %c0_i32, %c0_i32_0 : i32, i32
  }
  func.func @transform_3(%arg0: i32) -> (i32, i32) {
    %c0_i32 = arith.constant 0 : i32
    %c0_i32_0 = arith.constant 0 : i32
    %c0_i32_1 = arith.constant 0 : i32
    return %c0_i32, %c0_i32_0 : i32, i32
  }
  func.func @transform_4(%arg0: i32) -> (i32, i32) {
    %c0_i32 = arith.constant 0 : i32
    %c0_i32_0 = arith.constant 0 : i32
    %c0_i32_1 = arith.constant 0 : i32
    return %c0_i32, %c0_i32_0 : i32, i32
  }
  func.func @transform_5(%arg0: i32) -> (i32, i32) {
    %c0_i32 = arith.constant 0 : i32
    %c0_i32_0 = arith.constant 0 : i32
    %c0_i32_1 = arith.constant 0 : i32
    return %c0_i32, %c0_i32_0 : i32, i32
  }
  func.func @transform_6(%arg0: i32) -> (i32, i32) {
    %c0_i32 = arith.constant 0 : i32
    %c0_i32_0 = arith.constant 0 : i32
    %c0_i32_1 = arith.constant 0 : i32
    return %c0_i32, %c0_i32_0 : i32, i32
  }
  func.func @transform_7(%arg0: i32) -> (i32, i32) {
    %c0_i32 = arith.constant 0 : i32
    %c0_i32_0 = arith.constant 0 : i32
    return %arg0, %c0_i32 : i32, i32
  }
  func.func @transform_8(%arg0: i32) -> (i32, i32) {
    %c0_i32 = arith.constant 0 : i32
    %c0_i32_0 = arith.constant 0 : i32
    return %arg0, %c0_i32 : i32, i32
  }
}

module attributes {stable_mosaic.version = 11 : i64} {
  func.func @actor_kernel(%arg0: i32, %arg1: memref<8x16xf32, #tpu.memory_space<vmem>>, %arg2: memref<16x32xf32, #tpu.memory_space<vmem>>, %arg3: memref<1x32xf32, #tpu.memory_space<vmem>>, %arg4: memref<32x32xf32, #tpu.memory_space<vmem>>, %arg5: memref<1x32xf32, #tpu.memory_space<vmem>>, %arg6: memref<32x256xf32, #tpu.memory_space<vmem>>, %arg7: memref<1x256xf32, #tpu.memory_space<vmem>>, %arg8: memref<8x128xf32, #tpu.memory_space<vmem>>, %arg9: memref<8x640xf32, #tpu.memory_space<vmem>>) attributes {dimension_semantics = [#tpu.dimension_semantics<parallel>], iteration_bounds = array<i64: 1>, scalar_prefetch = 0 : i64, scratch_operands = 0 : i64, tpu.core_type = #tpu.core_type<tc>, window_params = [{transform_indices = @transform_0, window_bounds = array<i64: 8, 16>}, {pipeline_mode = #tpu.pipeline_mode<synchronous>, transform_indices = @transform_1, window_bounds = array<i64: 16, 32>}, {pipeline_mode = #tpu.pipeline_mode<synchronous>, transform_indices = @transform_2, window_bounds = array<i64: 1, 32>}, {pipeline_mode = #tpu.pipeline_mode<synchronous>, transform_indices = @transform_3, window_bounds = array<i64: 32, 32>}, {pipeline_mode = #tpu.pipeline_mode<synchronous>, transform_indices = @transform_4, window_bounds = array<i64: 1, 32>}, {pipeline_mode = #tpu.pipeline_mode<synchronous>, transform_indices = @transform_5, window_bounds = array<i64: 32, 256>}, {pipeline_mode = #tpu.pipeline_mode<synchronous>, transform_indices = @transform_6, window_bounds = array<i64: 1, 256>}, {transform_indices = @transform_7, window_bounds = array<i64: 8, 128>}, {transform_indices = @transform_8, window_bounds = array<i64: 8, 640>}]} {
    %c0 = arith.constant 0 : index
    %c0_0 = arith.constant 0 : index
    %0 = vector.load %arg1[%c0, %c0_0] : memref<8x16xf32, #tpu.memory_space<vmem>>, vector<8x16xf32>
    %c0_1 = arith.constant 0 : index
    %c0_2 = arith.constant 0 : index
    %1 = vector.load %arg2[%c0_1, %c0_2] : memref<16x32xf32, #tpu.memory_space<vmem>>, vector<16x32xf32>
    %cst = arith.constant dense<0.000000e+00> : vector<8x32xf32>
    %2 = tpu.matmul %0, %1, %cst {dimension_numbers = #tpu.dot_dimension_numbers<[1], [0], [0], [1], [0, 0, 1, 1], [], []>} : vector<8x16xf32>, vector<16x32xf32>, vector<8x32xf32> -> vector<8x32xf32>
    %c0_3 = arith.constant 0 : index
    %c0_4 = arith.constant 0 : index
    %3 = vector.load %arg3[%c0_3, %c0_4] : memref<1x32xf32, #tpu.memory_space<vmem>>, vector<1x32xf32>
    %4 = vector.broadcast %3 : vector<1x32xf32> to vector<8x32xf32>
    %5 = arith.addf %2, %4 : vector<8x32xf32>
    %cst_5 = arith.constant 0.00999999977 : f32
    %6 = vector.broadcast %cst_5 : f32 to vector<8x32xf32>
    %7 = arith.mulf %6, %5 : vector<8x32xf32>
    %8 = arith.maximumf %5, %7 : vector<8x32xf32>
    %c0_6 = arith.constant 0 : index
    %c0_7 = arith.constant 0 : index
    %9 = vector.load %arg4[%c0_6, %c0_7] : memref<32x32xf32, #tpu.memory_space<vmem>>, vector<32x32xf32>
    %cst_8 = arith.constant dense<0.000000e+00> : vector<8x32xf32>
    %10 = tpu.matmul %8, %9, %cst_8 {dimension_numbers = #tpu.dot_dimension_numbers<[1], [0], [0], [1], [0, 0, 1, 1], [], []>} : vector<8x32xf32>, vector<32x32xf32>, vector<8x32xf32> -> vector<8x32xf32>
    %c0_9 = arith.constant 0 : index
    %c0_10 = arith.constant 0 : index
    %11 = vector.load %arg5[%c0_9, %c0_10] : memref<1x32xf32, #tpu.memory_space<vmem>>, vector<1x32xf32>
    %12 = vector.broadcast %11 : vector<1x32xf32> to vector<8x32xf32>
    %13 = arith.addf %10, %12 : vector<8x32xf32>
    %cst_11 = arith.constant 0.00999999977 : f32
    %14 = vector.broadcast %cst_11 : f32 to vector<8x32xf32>
    %15 = arith.mulf %14, %13 : vector<8x32xf32>
    %16 = arith.maximumf %13, %15 : vector<8x32xf32>
    %17 = arith.mulf %16, %16 : vector<8x32xf32>
    %cst_12 = arith.constant dense<0.000000e+00> : vector<8xf32>
    %18 = vector.multi_reduction <add>, %17, %cst_12 [1] : vector<8x32xf32> to vector<8xf32>
    %19 = vector.shape_cast %18 : vector<8xf32> to vector<8x1xf32>
    %cst_13 = arith.constant 9.99999996E-13 : f32
    %20 = vector.broadcast %cst_13 : f32 to vector<8x1xf32>
    %21 = arith.addf %19, %20 : vector<8x1xf32>
    %22 = math.rsqrt %21 : vector<8x1xf32>
    %23 = vector.broadcast %22 : vector<8x1xf32> to vector<8x32xf32>
    %24 = arith.mulf %16, %23 : vector<8x32xf32>
    %c0_14 = arith.constant 0 : index
    %c0_15 = arith.constant 0 : index
    %25 = vector.load %arg6[%c0_14, %c0_15] : memref<32x256xf32, #tpu.memory_space<vmem>>, vector<32x256xf32>
    %cst_16 = arith.constant dense<0.000000e+00> : vector<8x256xf32>
    %26 = tpu.matmul %24, %25, %cst_16 {dimension_numbers = #tpu.dot_dimension_numbers<[1], [0], [0], [1], [0, 0, 1, 1], [], []>} : vector<8x32xf32>, vector<32x256xf32>, vector<8x256xf32> -> vector<8x256xf32>
    %c0_17 = arith.constant 0 : index
    %c0_18 = arith.constant 0 : index
    %27 = vector.load %arg7[%c0_17, %c0_18] : memref<1x256xf32, #tpu.memory_space<vmem>>, vector<1x256xf32>
    %28 = vector.broadcast %27 : vector<1x256xf32> to vector<8x256xf32>
    %29 = arith.addf %26, %28 : vector<8x256xf32>
    %30 = vector.extract_strided_slice %29 {offsets = [0, 0], sizes = [8, 128], strides = [1, 1]} : vector<8x256xf32> to vector<8x128xf32>
    %31 = vector.extract_strided_slice %29 {offsets = [0, 128], sizes = [8, 128], strides = [1, 1]} : vector<8x256xf32> to vector<8x128xf32>
    %cst_19 = arith.constant -2.000000e+01 : f32
    %cst_20 = arith.constant 2.000000e+00 : f32
    %32 = vector.broadcast %cst_19 : f32 to vector<8x128xf32>
    %33 = arith.maximumf %32, %31 : vector<8x128xf32>
    %34 = vector.broadcast %cst_20 : f32 to vector<8x128xf32>
    %35 = arith.minimumf %34, %33 : vector<8x128xf32>
    %cst_21 = arith.constant 5.000000e-01 : f32
    %36 = vector.broadcast %cst_21 : f32 to vector<8x128xf32>
    %37 = arith.mulf %36, %35 : vector<8x128xf32>
    %38 = math.exp %37 : vector<8x128xf32>
    %c0_22 = arith.constant 0 : index
    %c0_23 = arith.constant 0 : index
    %39 = vector.load %arg8[%c0_22, %c0_23] : memref<8x128xf32, #tpu.memory_space<vmem>>, vector<8x128xf32>
    %40 = arith.mulf %38, %39 : vector<8x128xf32>
    %41 = arith.addf %30, %40 : vector<8x128xf32>
    %42 = arith.mulf %39, %39 : vector<8x128xf32>
    %cst_24 = arith.constant dense<0.000000e+00> : vector<8xf32>
    %43 = vector.multi_reduction <add>, %42, %cst_24 [1] : vector<8x128xf32> to vector<8xf32>
    %44 = vector.shape_cast %43 : vector<8xf32> to vector<8x1xf32>
    %cst_25 = arith.constant dense<0.000000e+00> : vector<8xf32>
    %45 = vector.multi_reduction <add>, %35, %cst_25 [1] : vector<8x128xf32> to vector<8xf32>
    %46 = vector.shape_cast %45 : vector<8xf32> to vector<8x1xf32>
    %47 = arith.addf %44, %46 : vector<8x1xf32>
    %cst_26 = arith.constant 7.35150814 : f32
    %48 = vector.broadcast %cst_26 : f32 to vector<8x1xf32>
    %49 = arith.addf %47, %48 : vector<8x1xf32>
    %cst_27 = arith.constant -5.000000e-01 : f32
    %50 = vector.broadcast %cst_27 : f32 to vector<8x1xf32>
    %51 = arith.mulf %50, %49 : vector<8x1xf32>
    %cst_28 = arith.constant 0.693147182 : f32
    %52 = vector.broadcast %cst_28 : f32 to vector<8x128xf32>
    %53 = arith.subf %52, %41 : vector<8x128xf32>
    %cst_29 = arith.constant -2.000000e+00 : f32
    %54 = vector.broadcast %cst_29 : f32 to vector<8x128xf32>
    %55 = arith.mulf %54, %41 : vector<8x128xf32>
    %cst_30 = arith.constant 0.000000e+00 : f32
    %56 = vector.broadcast %cst_30 : f32 to vector<8x128xf32>
    %57 = arith.maximumf %56, %55 : vector<8x128xf32>
    %58 = vector.broadcast %cst_30 : f32 to vector<8x128xf32>
    %59 = arith.subf %58, %55 : vector<8x128xf32>
    %60 = arith.cmpf one, %59, %59 : vector<8x128xf32>
    %61 = vector.broadcast %cst_30 : f32 to vector<8x128xf32>
    %62 = arith.addf %61, %55 : vector<8x128xf32>
    %63 = math.absf %59 : vector<8x128xf32>
    %cst_31 = arith.constant 0.000000e+00 : f32
    %64 = vector.broadcast %cst_31 : f32 to vector<8x128xf32>
    %65 = arith.subf %64, %63 : vector<8x128xf32>
    %66 = math.exp %65 : vector<8x128xf32>
    %67 = math.log1p %66 : vector<8x128xf32>
    %68 = arith.addf %57, %67 : vector<8x128xf32>
    %69 = arith.select %60, %62, %68 : vector<8x128xi1>, vector<8x128xf32>
    %70 = arith.subf %53, %69 : vector<8x128xf32>
    %cst_32 = arith.constant 2.000000e+00 : f32
    %71 = vector.broadcast %cst_32 : f32 to vector<8x128xf32>
    %72 = arith.mulf %71, %70 : vector<8x128xf32>
    %cst_33 = arith.constant dense<0.000000e+00> : vector<8xf32>
    %73 = vector.multi_reduction <add>, %72, %cst_33 [1] : vector<8x128xf32> to vector<8xf32>
    %74 = vector.shape_cast %73 : vector<8xf32> to vector<8x1xf32>
    %75 = arith.subf %51, %74 : vector<8x1xf32>
    %76 = math.tanh %41 : vector<8x128xf32>
    %c0_34 = arith.constant 0 : index
    %c0_35 = arith.constant 0 : index
    %77 = vector.load %arg9[%c0_34, %c0_35] : memref<8x640xf32, #tpu.memory_space<vmem>>, vector<8x128xf32>
    tpu.vector_store %arg9[%c0_34, %c0_35], %76 {strides = array<i32>} : memref<8x640xf32, #tpu.memory_space<vmem>>, vector<8x128xf32>,
    %c0_36 = arith.constant 0 : index
    %c128 = arith.constant 128 : index
    %78 = vector.load %arg9[%c0_36, %c128] : memref<8x640xf32, #tpu.memory_space<vmem>>, vector<8x128xf32>
    tpu.vector_store %arg9[%c0_36, %c128], %30 {strides = array<i32>} : memref<8x640xf32, #tpu.memory_space<vmem>>, vector<8x128xf32>,
    %c0_37 = arith.constant 0 : index
    %c256 = arith.constant 256 : index
    %79 = vector.load %arg9[%c0_37, %c256] : memref<8x640xf32, #tpu.memory_space<vmem>>, vector<8x128xf32>
    tpu.vector_store %arg9[%c0_37, %c256], %35 {strides = array<i32>} : memref<8x640xf32, #tpu.memory_space<vmem>>, vector<8x128xf32>,
    %c0_38 = arith.constant 0 : index
    %c384 = arith.constant 384 : index
    %80 = vector.load %arg9[%c0_38, %c384] : memref<8x640xf32, #tpu.memory_space<vmem>>, vector<8x128xf32>
    tpu.vector_store %arg9[%c0_38, %c384], %41 {strides = array<i32>} : memref<8x640xf32, #tpu.memory_space<vmem>>, vector<8x128xf32>,
    %81 = vector.shape_cast %75 : vector<8x1xf32> to vector<8x1xf32>
    %82 = vector.broadcast %81 : vector<8x1xf32> to vector<8x128xf32>
    %c0_39 = arith.constant 0 : index
    %c512 = arith.constant 512 : index
    %83 = vector.load %arg9[%c0_39, %c512] : memref<8x640xf32, #tpu.memory_space<vmem>>, vector<8x128xf32>
    tpu.vector_store %arg9[%c0_39, %c512], %82 {strides = array<i32>} : memref<8x640xf32, #tpu.memory_space<vmem>>, vector<8x128xf32>,
    return
  }
  func.func @transform_0(%arg0: i32) -> (i32, i32) {
    %c0_i32 = arith.constant 0 : i32
    %c0_i32_0 = arith.constant 0 : i32
    return %arg0, %c0_i32 : i32, i32
  }
  func.func @transform_1(%arg0: i32) -> (i32, i32) {
    %c0_i32 = arith.constant 0 : i32
    %c0_i32_0 = arith.constant 0 : i32
    %c0_i32_1 = arith.constant 0 : i32
    return %c0_i32, %c0_i32_0 : i32, i32
  }
  func.func @transform_2(%arg0: i32) -> (i32, i32) {
    %c0_i32 = arith.constant 0 : i32
    %c0_i32_0 = arith.constant 0 : i32
    %c0_i32_1 = arith.constant 0 : i32
    return %c0_i32, %c0_i32_0 : i32, i32
  }
  func.func @transform_3(%arg0: i32) -> (i32, i32) {
    %c0_i32 = arith.constant 0 : i32
    %c0_i32_0 = arith.constant 0 : i32
    %c0_i32_1 = arith.constant 0 : i32
    return %c0_i32, %c0_i32_0 : i32, i32
  }
  func.func @transform_4(%arg0: i32) -> (i32, i32) {
    %c0_i32 = arith.constant 0 : i32
    %c0_i32_0 = arith.constant 0 : i32
    %c0_i32_1 = arith.constant 0 : i32
    return %c0_i32, %c0_i32_0 : i32, i32
  }
  func.func @transform_5(%arg0: i32) -> (i32, i32) {
    %c0_i32 = arith.constant 0 : i32
    %c0_i32_0 = arith.constant 0 : i32
    %c0_i32_1 = arith.constant 0 : i32
    return %c0_i32, %c0_i32_0 : i32, i32
  }
  func.func @transform_6(%arg0: i32) -> (i32, i32) {
    %c0_i32 = arith.constant 0 : i32
    %c0_i32_0 = arith.constant 0 : i32
    %c0_i32_1 = arith.constant 0 : i32
    return %c0_i32, %c0_i32_0 : i32, i32
  }
  func.func @transform_7(%arg0: i32) -> (i32, i32) {
    %c0_i32 = arith.constant 0 : i32
    %c0_i32_0 = arith.constant 0 : i32
    return %arg0, %c0_i32 : i32, i32
  }
  func.func @transform_8(%arg0: i32) -> (i32, i32) {
    %c0_i32 = arith.constant 0 : i32
    %c0_i32_0 = arith.constant 0 : i32
    return %arg0, %c0_i32 : i32, i32
  }
}

</mosaic_0001>

<bundles_post_ra>
// kernel: tpu_custom_call.1
= control target key start
LH: loop header
LB: loop body
LE: loop exit
PB: predicated region body
PF: predicated region fallthrough
CT: control target
= control target key end

     0   :  { %13 = vsyncpa [#allocation3], 0  ;;  %s748_s0 = inlined_call_operand.hbm [shape: f32[8,16], index: 0, kind: input, shape index: {}]   ;;  %s749_s1 = inlined_call_operand.hbm [shape: f32[16,32], index: 1, kind: input, shape index: {}]   ;;  %s750_s2 = inlined_call_operand.vmem [shape: f32[1,32], index: 2, kind: input, shape index: {}]   ;;  %s751_s3 = inlined_call_operand.hbm [shape: f32[32,32], index: 3, kind: input, shape index: {}]   ;;  %s752_s4 = inlined_call_operand.vmem [shape: f32[1,32], index: 4, kind: input, shape index: {}]   ;;  %s753_s5 = inlined_call_operand.hbm [shape: f32[32,256], index: 5, kind: input, shape index: {}]   ;;  %s754_s6 = inlined_call_operand.vmem [shape: f32[1,256], index: 6, kind: input, shape index: {}]   ;;  %s755_s7 = inlined_call_operand.vmem [shape: f32[8,128], index: 7, kind: input, shape index: {}]   ;;  %s756_s8 = inlined_call_operand.hbm [shape: f32[8,640], index: 8, kind: output, shape index: {}]  }
   0x1   :  { %14 = vsyncpa [#allocation6], 0 }
   0x2   :  { %15 = vsyncpa [#allocation9], 0 }
   0x3   :  { %16 = vsyncpa [#allocation4], 0  ;;  %s610_s27 = smov [#allocation5]   ;;  %s492_s9 = scalar_lea.hbm %s749_s1, 256 }
   0x4   :  { %s32_s28 = sshll.u32 %s610_s27, 4  ;;  %p493_p0 = scmp.ne.s32.totalorder %s749_s1, %s492_s9  ;;  %s33_s28 = int_to_ptr.vmem [resolvable:$true] %s32_s28 }
   0x5   :  { %p496_p1 = scmp.lt.u32.totalorder %s492_s9, %s749_s1 }
   0x7   :  { %p498_p2 = pnand %p496_p1, %p493_p0 }
   0x9   :  { %501 = shalt.err (!%p498_p2)
}
   0xa   :  { %s502_s14 = scalar_lea.vmem %s33_s28, 256  ;;  %p507_p4 = scmp.lt.s32.totalorder %s33_s28, %s33_s28 }
   0xb   :  { %p503_p3 = scmp.ne.s32.totalorder %s33_s28, %s502_s14  ;;  %p508_p5 = scmp.lt.s32.totalorder %s502_s14, %s502_s14 }
   0xd   :  { %p509_p6 = por %p508_p5, %p507_p4 }
   0xf   :  { %p510_p7 = pnand %p509_p6, %p503_p3 }
  0x11   :  { %513 = shalt.err (!%p510_p7)
}
  0x12   :  { %s611_s15 = smov 128   ;;  %s612_s16 = smov 8  }
  0x13   :  { %38 = dma.hbm_to_vmem [thread:$0]  %s749_s1, 256, %s33_s28, [#allocation6], %s611_s15, %s611_s15, %s612_s16  }
  0x14   :  { %s613_s19 = smov [#allocation2]   ;;  %s614_s21 = smov [#allocation7]  }
  0x15   :  { %s23_s20 = sshll.u32 %s613_s19, 4  ;;  %s46_s22 = sshll.u32 %s614_s21, 4  ;;  %s24_s20 = int_to_ptr.vmem [resolvable:$true] %s23_s20  ;;  %s47_s22 = int_to_ptr.vmem [resolvable:$true] %s46_s22 }
  0x16   :  { %s514_s25 = scalar_lea.hbm %s748_s0, 128 }
  0x17   :  { %p515_p8 = scmp.ne.s32.totalorder %s748_s0, %s514_s25  ;;  %p518_p9 = scmp.lt.u32.totalorder %s514_s25, %s748_s0 }
  0x19   :  { %p520_p10 = pnand %p518_p9, %p515_p8 }
  0x1b   :  { %523 = shalt.err (!%p520_p10)
}
  0x1c   :  { %s524_s1 = scalar_lea.vmem %s24_s20, 128  ;;  %p529_p12 = scmp.lt.s32.totalorder %s24_s20, %s24_s20 }
  0x1d   :  { %p525_p11 = scmp.ne.s32.totalorder %s24_s20, %s524_s1  ;;  %p530_p13 = scmp.lt.s32.totalorder %s524_s1, %s524_s1 }
  0x1f   :  { %p531_p0 = por %p530_p13, %p529_p12 }
  0x21   :  { %p532_p1 = pnand %p531_p0, %p525_p11 }
  0x23   :  { %535 = shalt.err (!%p532_p1)
}
  0x24   :  { %26 = dma.hbm_to_vmem [thread:$0]  %s748_s0, 128, %s24_s20, [#allocation3]  }
  0x25   :  { %s536_s12 = scalar_lea.hbm %s751_s3, 512 }
  0x26   :  { %p537_p2 = scmp.ne.s32.totalorder %s751_s3, %s536_s12  ;;  %p540_p3 = scmp.lt.u32.totalorder %s536_s12, %s751_s3 }
  0x28   :  { %p542_p4 = pnand %p540_p3, %p537_p2 }
  0x2a   :  { %545 = shalt.err (!%p542_p4)
}
  0x2b   :  { %s546_s19 = scalar_lea.vmem %s47_s22, 512  ;;  %p551_p6 = scmp.lt.s32.totalorder %s47_s22, %s47_s22 }
  0x2c   :  { %p547_p5 = scmp.ne.s32.totalorder %s47_s22, %s546_s19  ;;  %p552_p7 = scmp.lt.s32.totalorder %s546_s19, %s546_s19 }
  0x2e   :  { %p553_p8 = por %p552_p7, %p551_p6 }
  0x30   :  { %p554_p9 = pnand %p553_p8, %p547_p5 }
  0x32   :  { %557 = shalt.err (!%p554_p9)
}
  0x33   :  { %52 = dma.hbm_to_vmem [thread:$0]  %s751_s3, 512, %s47_s22, [#allocation6], %s611_s15, %s611_s15, %s612_s16  }
  0x34   :  { %s615_s21 = smov [#allocation8]   ;;  %s558_s26 = scalar_lea.hbm %s753_s5, 1024 }
  0x35   :  { %s60_s23 = sshll.u32 %s615_s21, 4  ;;  %p559_p10 = scmp.ne.s32.totalorder %s753_s5, %s558_s26  ;;  %s61_s23 = int_to_ptr.vmem [resolvable:$true] %s60_s23 }
  0x36   :  { %p562_p11 = scmp.lt.u32.totalorder %s558_s26, %s753_s5 }
  0x38   :  { %p564_p12 = pnand %p562_p11, %p559_p10 }
  0x3a   :  { %567 = shalt.err (!%p564_p12)
}
  0x3b   :  { %s568_s28 = scalar_lea.vmem %s61_s23, 1024  ;;  %p573_p0 = scmp.lt.s32.totalorder %s61_s23, %s61_s23 }
  0x3c   :  { %p569_p13 = scmp.ne.s32.totalorder %s61_s23, %s568_s28  ;;  %p574_p1 = scmp.lt.s32.totalorder %s568_s28, %s568_s28 }
  0x3e   :  { %p575_p2 = por %p574_p1, %p573_p0 }
  0x40   :  { %p576_p3 = pnand %p575_p2, %p569_p13 }
  0x42   :  { %579 = shalt.err (!%p576_p3)
}
  0x43   :  { %s616_s3 = smov 256   ;;  %s617_s15 = smov 16  }
  0x44   :  { %66 = dma.hbm_to_vmem [thread:$0]  %s753_s5, 1024, %s61_s23, [#allocation9], %s616_s3, %s616_s3, %s617_s15  }
  0x45   :  { %602 = dma.done.wait [#allocation3], 128  }
  0x46   :  { %603 = vsyncadd [#allocation3], 4294967168 }
  0x47   :  { %604 = dma.done.wait [#allocation6], 768  }
  0x48   :  { %605 = vsyncadd [#allocation6], 4294966528 }
  0x49   :  { %606 = dma.done.wait [#allocation9], 1024  }
  0x4a   :  { %607 = vsyncadd [#allocation9], 4294966272  ;;  %v618_v0 = vmov 0.0|0.0   ;;  %vm619_vm0 = vmmov 0   ;;  %v620_v1 = vmov 0.0   ;;  %v84_v2 = vld [vmem:[#allocation5] sm:$0xff]  ;;  %v273_v44 = vlaneseq }
  0x4b   :  { %453 = vmatprep.subr.bf16.mxu0 %v618_v0  ;;  %439 = vmatprep.mubr.msk.f32.mxu0 %vm619_vm0, %v620_v1  ;;  %v85_v3 = vld [vmem:[#allocation5 + $0x8] sm:$0xff]  ;;  %v83_v5 = vld [vmem:[#allocation2] sm:$0xff]  ;;  %vm93_vm1 = vcmask 130048   ;;  %v169_v6 = vld [vmem:[#allocation7] sm:$0xff]  ;;  %vm180_vm2 = vcmask 261120  }
  0x4c   :  { %456 = vmatprep.subr.bf16.mxu1 %v618_v0  ;;  %450 = vmatprep.mubr.msk.f32.mxu1 %vm619_vm0, %v620_v1  ;;  %v454_v4 = vpack.c.bf16 %v85_v3, %v84_v2  ;;  %v170_v7 = vld [vmem:[#allocation7 + $0x8] sm:$0xff]  ;;  %v171_v9 = vld [vmem:[#allocation7 + $0x10] sm:$0xff]  ;;  %v172_v10 = vld [vmem:[#allocation7 + $0x18] sm:$0xff]  ;;  %v274_v45 = vshrl.u32 %v273_v44, 7 }
  0x4d   :  { %v457_v8 = vpack.c.bf16 %v170_v7, %v169_v6  ;;  %v460_v11 = vpack.c.bf16 %v172_v10, %v171_v9  ;;  %v422_v12 = vld [vmem:[%s750_s2] ss:$0 sm:$0xff]  ;;  %v266_v27 = vld [vmem:[#allocation8 + $0x18] sm:$0xff]  ;;  %v263_v28 = vld [vmem:[#allocation8] sm:$0xff] }
  0x4e   :  { %455 = vmatpush3.bf16.msra.mxu0 %v454_v4  ;;  %v424_v18 = vld [vmem:[%s752_s4] ss:$0 sm:$0xff]  ;;  %v265_v30 = vld [vmem:[#allocation8 + $0x10] sm:$0xff]  ;;  %v270_v32 = vld [vmem:[#allocation8 + $0x38] sm:$0xff]  ;;  %v275_v46 = vsub.s32 0, %v274_v45  ;;  %v279_v48 = vsub.s32 1, %v274_v45 }
  0x4f   :  { %458 = vmatpush3.bf16.msra.mxu1 %v457_v8  ;;  %v264_v26 = vld [vmem:[#allocation8 + $0x8] sm:$0xff]  ;;  %v464_v33 = vpack.c.bf16 %v265_v30, %v263_v28  ;;  %v267_v35 = vld [vmem:[#allocation8 + $0x20] sm:$0xff]  ;;  %v269_v36 = vld [vmem:[#allocation8 + $0x30] sm:$0xff] }
  0x50   :  { %459 = vmatprep.subr.bf16.mxu1 %v618_v0  ;;  %v462_v29 = vpack.c.bf16 %v266_v27, %v264_v26  ;;  %v268_v31 = vld [vmem:[#allocation8 + $0x28] sm:$0xff]  ;;  %v468_v37 = vpack.c.bf16 %v269_v36, %v267_v35 }
  0x51   :  { %440 = vmatmul.mubr.msk.f32.vlgmr.msra.gmra.mrb[0].mxu0 %vm93_vm1, %v83_v5  ;;  %v466_v34 = vpack.c.bf16 %v270_v32, %v268_v31  ;;  %v362_v42 = vld [vmem:[%s755_s7] sm:$0xff] }
  0x52   :  { %350 = vmatprep.mubr.f32.mxu0 %v620_v1  ;;  %463 = vmatprep.subr.bf16.mxu0 %v462_v29  ;;  %v365_v43 = vmul.f32 %v362_v42, %v362_v42  ;;  %v271_v47 = vld [vmem:[%s754_s6] sm:$0x3]  ;;  %s621_s6 = smov [#allocation10]  }
  0x53   :  { %461 = vmatpush3.bf16.msra.mxu1 %v460_v11  ;;  %465 = vmatpush1.bf16.msra.mxu0 %v464_v33  ;;  %v276_v49 = vrot.slane %v271_v47, %v275_v46  ;;  %v280_v50 = vrot.slane %v271_v47, %v279_v48  ;;  %s411_s7 = sshll.u32 %s621_s6, 4  ;;  %s412_s7 = int_to_ptr.vmem [resolvable:$true] %s411_s7 }
  0x54   :  { %467 = vmatprep.subr.bf16.mxu0 %v466_v34  ;;  %s580_s14 = scalar_lea.vmem %s412_s7, 640  ;;  %p585_p5 = scmp.lt.s32.totalorder %s412_s7, %s412_s7 }
  0x55   :  { %p581_p4 = scmp.ne.s32.totalorder %s412_s7, %s580_s14  ;;  %p586_p6 = scmp.lt.s32.totalorder %s580_s14, %s580_s14 }
  0x57   :  { %469 = vmatpush1.bf16.msra.mxu0 %v468_v37  ;;  %p587_p7 = por %p586_p6, %p585_p5 }
  0x59   :  { %p588_p8 = pnand %p587_p7, %p581_p4 }
 0x124   :  { %v163_v13 = vpop.f32.mrb[0].mxu0 }
 0x125   :  { %v164_v14 = vadd.f32 %v422_v12, %v163_v13  ;;  %v441_v15 = vpop.f32.mrb[1].mxu0 }
 0x127   :  { %v167_v16 = vmul.f32 0.01, %v164_v14 }
 0x129   :  { %v168_v17 = vmax.f32 %v164_v14, %v167_v16 }
 0x12b   :  { %451 = vmatmul.mubr.msk.f32.vlgmr.msra.gmra.mrb[0].mxu1 %vm180_vm2, %v168_v17 }
 0x1fe   :  { %v250_v19 = vpop.f32.mrb[0].mxu1 }
 0x1ff   :  { %v251_v20 = vadd.f32 %v424_v18, %v250_v19  ;;  %v452_v21 = vpop.f32.mrb[1].mxu1 }
 0x201   :  { %v254_v22 = vmul.f32 0.01, %v251_v20 }
 0x203   :  { %v255_v23 = vmax.f32 %v251_v20, %v254_v22 }
 0x205   :  { %v256_v24 = vmul.f32 %v255_v23, %v255_v23 }
 0x207   :  { %v257_v25 = vsel %vm180_vm2, %v256_v24, 0.0 }
 0x208   :  { %258 = vadd.xlane.f32.xlu0 %v257_v25 }
 0x20c   :  { %366 = vadd.xlane.f32.xlu0 %v365_v43 }
 0x295   :  { %v259_v38 = vpop.xlane.xlu0 %258 }
 0x296   :  { %v260_v39 = vadd.f32 1e-12, %v259_v38 }
 0x298   :  { %482 = vrsqrt.f32 %v260_v39 }
 0x299   :  { %v367_v19 = vpop.xlane.xlu0 %366 }
 0x2a2   :  { %v483_v40 = vpop.eup %482 }
 0x2a3   :  { %v262_v41 = vmul.f32 %v483_v40, %v255_v23 }
 0x2a5   :  { %426 = vmatmul.mubr.msk.f32.vlgmr.msra.gmra.mrb[2].mxu0 %vm180_vm2, %v262_v41 }
 0x378   :  { %v352_v51 = vpop.f32.mrb[2].mxu0 }
 0x379   :  { %v353_v52 = vadd.f32 %v352_v51, %v276_v49  ;;  %v354_v53 = vpop.f32.mrb[3].mxu0 }
 0x37a   :  { %v355_v54 = vadd.f32 %v354_v53, %v280_v50 }
 0x37b   :  { %401 = vst [vmem:[#allocation10 + $0x8] sm:$0xff] %v353_v52 }
 0x37c   :  { %v357_v55 = vmax.f32 %v355_v54, -20.0 }
 0x37e   :  { %v358_v56 = vmin.f32 %v357_v55, 2.0 }
 0x380   :  { %v359_v57 = vmul.f32 0.5, %v358_v56  ;;  %402 = vst [vmem:[#allocation10 + $0x10] sm:$0xff] %v358_v56  ;;  %368 = vadd.xlane.f32.xlu1 %v358_v56 }
 0x382   :  { %v360_v58 = vmul.f32 1.442695, %v359_v57 }
 0x384   :  { %484 = vpow2.f32 %v360_v58 }
 0x38e   :  { %v485_v59 = vpop.eup %484 }
 0x38f   :  { %v363_v60 = vmul.f32 %v485_v59, %v362_v42 }
 0x391   :  { %v364_v61 = vadd.f32 %v363_v60, %v353_v52 }
 0x393   :  { %486 = vtanh.f32 %v364_v61  ;;  %403 = vst [vmem:[#allocation10 + $0x18] sm:$0xff] %v364_v61  ;;  %v374_v62 = vmul.f32 -2.0, %v364_v61  ;;  %v373_v15 = vsub.f32 0.6931472, %v364_v61 }
 0x395   :  { %v376_v63 = vsub.f32 0.0, %v374_v62  ;;  %v375_v12 = vmax.f32 %v374_v62, 0.0 }
 0x397   :  { %v379_v0 = vand.u32 2147483647, %v376_v63  ;;  %vm377_vm4 = vcmp.ne.f32.partialorder %v376_v63, %v376_v63 }
 0x399   :  { %v380_v1 = vsub.f32 0.0, %v379_v0 }
 0x39b   :  { %v381_v2 = vmul.f32 1.442695, %v380_v1 }
 0x39d   :  { %v487_v3 = vpop.eup %486  ;;  %488 = vpow2.f32 %v381_v2 }
 0x39e   :  { %400 = vst [vmem:[#allocation10] sm:$0xff] %v487_v3 }
 0x3a7   :  { %v489_v4 = vpop.eup %488 }
 0x3a8   :  { %v383_v5 = vadd.f32 1.0, %v489_v4  ;;  %v386_v6 = vmul.f32 -0.5, %v489_v4  ;;  %v389_v8 = vand.u32 2147483647, %v489_v4 }
 0x3aa   :  { %490 = vlog2.f32 %v383_v5  ;;  %v387_v7 = vadd.f32 1.0, %v386_v6  ;;  %vm390_vm3 = vcmp.lt.f32.partialorder %v389_v8, 0.0004427343 }
 0x3ac   :  { %v388_v11 = vmul.f32 %v489_v4, %v387_v7 }
 0x3b4   :  { %v491_v9 = vpop.eup %490 }
 0x3b5   :  { %v385_v10 = vmul.f32 0.6931472, %v491_v9 }
 0x3b7   :  { %v391_v13 = vsel %vm390_vm3, %v388_v11, %v385_v10 }
 0x3b8   :  { %v392_v14 = vadd.f32 %v391_v13, %v375_v12 }
 0x3ba   :  { %v393_v16 = vsel %vm377_vm4, %v374_v62, %v392_v14 }
 0x3bb   :  { %v394_v17 = vsub.f32 %v373_v15, %v393_v16 }
 0x3bd   :  { %v395_v18 = vmul.f32 2.0, %v394_v17 }
 0x3bf   :  { %396 = vadd.xlane.f32.xlu1 %v395_v18 }
 0x40d   :  { %v369_v20 = vpop.xlane.xlu1 %368 }
 0x40e   :  { %v370_v21 = vadd.f32 %v369_v20, %v367_v19 }
 0x410   :  { %v371_v22 = vadd.f32 7.351508, %v370_v21 }
 0x412   :  { %v372_v23 = vmul.f32 -0.5, %v371_v22 }
 0x44c   :  { %v397_v24 = vpop.xlane.xlu1 %396 }
 0x44d   :  { %v398_v25 = vsub.f32 %v372_v23, %v397_v24 }
 0x44f   :  { %404 = vst [vmem:[#allocation10 + $0x20] sm:$0xff] %v398_v25 }
 0x450   :  { %591 = shalt.err (!%p588_p8)
}
 0x451   :  { %s592_s19 = scalar_lea.hbm %s756_s8, 640 }
 0x452   :  { %p593_p9 = scmp.ne.s32.totalorder %s756_s8, %s592_s19  ;;  %p596_p10 = scmp.lt.u32.totalorder %s592_s19, %s756_s8 }
 0x454   :  { %p598_p11 = pnand %p596_p10, %p593_p9 }
 0x456   :  { %601 = shalt.err (!%p598_p11)
}
 0x457   :  { %414 = dma.vmem_to_hbm [thread:$0]  %s412_s7, 640, %s756_s8, [#allocation4]  }
 0x458   :  { %608 = dma.done.wait [#allocation4], 640  }
 0x459   :  { %609 = vsyncadd [#allocation4], 4294966656 }
 0x45a   :  { %418 = vsyncpa [#allocation3], 1 }
 0x45b   :  { %419 = vsyncpa [#allocation6], 1 }
 0x45c   :  { %420 = vsyncpa [#allocation9], 1 }
 0x45d   :  { %421 = vsyncpa [#allocation4], 1 }

// kernel: tpu_custom_call.1
= control target key start
LH: loop header
LB: loop body
LE: loop exit
PB: predicated region body
PF: predicated region fallthrough
CT: control target
= control target key end

     0   :  { %13 = vsyncpa [#allocation3], 0  ;;  %s748_s0 = inlined_call_operand.hbm [shape: f32[8,16], index: 0, kind: input, shape index: {}]   ;;  %s749_s1 = inlined_call_operand.hbm [shape: f32[16,32], index: 1, kind: input, shape index: {}]   ;;  %s750_s2 = inlined_call_operand.vmem [shape: f32[1,32], index: 2, kind: input, shape index: {}]   ;;  %s751_s3 = inlined_call_operand.hbm [shape: f32[32,32], index: 3, kind: input, shape index: {}]   ;;  %s752_s4 = inlined_call_operand.vmem [shape: f32[1,32], index: 4, kind: input, shape index: {}]   ;;  %s753_s5 = inlined_call_operand.hbm [shape: f32[32,256], index: 5, kind: input, shape index: {}]   ;;  %s754_s6 = inlined_call_operand.vmem [shape: f32[1,256], index: 6, kind: input, shape index: {}]   ;;  %s755_s7 = inlined_call_operand.vmem [shape: f32[8,128], index: 7, kind: input, shape index: {}]   ;;  %s756_s8 = inlined_call_operand.hbm [shape: f32[8,640], index: 8, kind: output, shape index: {}]  }
   0x1   :  { %14 = vsyncpa [#allocation6], 0 }
   0x2   :  { %15 = vsyncpa [#allocation9], 0 }
   0x3   :  { %16 = vsyncpa [#allocation4], 0  ;;  %s610_s27 = smov [#allocation5]   ;;  %s492_s9 = scalar_lea.hbm %s749_s1, 256 }
   0x4   :  { %s32_s28 = sshll.u32 %s610_s27, 4  ;;  %p493_p0 = scmp.ne.s32.totalorder %s749_s1, %s492_s9  ;;  %s33_s28 = int_to_ptr.vmem [resolvable:$true] %s32_s28 }
   0x5   :  { %p496_p1 = scmp.lt.u32.totalorder %s492_s9, %s749_s1 }
   0x7   :  { %p498_p2 = pnand %p496_p1, %p493_p0 }
   0x9   :  { %501 = shalt.err (!%p498_p2)
}
   0xa   :  { %s502_s14 = scalar_lea.vmem %s33_s28, 256  ;;  %p507_p4 = scmp.lt.s32.totalorder %s33_s28, %s33_s28 }
   0xb   :  { %p503_p3 = scmp.ne.s32.totalorder %s33_s28, %s502_s14  ;;  %p508_p5 = scmp.lt.s32.totalorder %s502_s14, %s502_s14 }
   0xd   :  { %p509_p6 = por %p508_p5, %p507_p4 }
   0xf   :  { %p510_p7 = pnand %p509_p6, %p503_p3 }
  0x11   :  { %513 = shalt.err (!%p510_p7)
}
  0x12   :  { %s611_s15 = smov 128   ;;  %s612_s16 = smov 8  }
  0x13   :  { %38 = dma.hbm_to_vmem [thread:$0]  %s749_s1, 256, %s33_s28, [#allocation6], %s611_s15, %s611_s15, %s612_s16  }
  0x14   :  { %s613_s19 = smov [#allocation2]   ;;  %s614_s21 = smov [#allocation7]  }
  0x15   :  { %s23_s20 = sshll.u32 %s613_s19, 4  ;;  %s46_s22 = sshll.u32 %s614_s21, 4  ;;  %s24_s20 = int_to_ptr.vmem [resolvable:$true] %s23_s20  ;;  %s47_s22 = int_to_ptr.vmem [resolvable:$true] %s46_s22 }
  0x16   :  { %s514_s25 = scalar_lea.hbm %s748_s0, 128 }
  0x17   :  { %p515_p8 = scmp.ne.s32.totalorder %s748_s0, %s514_s25  ;;  %p518_p9 = scmp.lt.u32.totalorder %s514_s25, %s748_s0 }
  0x19   :  { %p520_p10 = pnand %p518_p9, %p515_p8 }
  0x1b   :  { %523 = shalt.err (!%p520_p10)
}
  0x1c   :  { %s524_s1 = scalar_lea.vmem %s24_s20, 128  ;;  %p529_p12 = scmp.lt.s32.totalorder %s24_s20, %s24_s20 }
  0x1d   :  { %p525_p11 = scmp.ne.s32.totalorder %s24_s20, %s524_s1  ;;  %p530_p13 = scmp.lt.s32.totalorder %s524_s1, %s524_s1 }
  0x1f   :  { %p531_p0 = por %p530_p13, %p529_p12 }
  0x21   :  { %p532_p1 = pnand %p531_p0, %p525_p11 }
  0x23   :  { %535 = shalt.err (!%p532_p1)
}
  0x24   :  { %26 = dma.hbm_to_vmem [thread:$0]  %s748_s0, 128, %s24_s20, [#allocation3]  }
  0x25   :  { %s536_s12 = scalar_lea.hbm %s751_s3, 512 }
  0x26   :  { %p537_p2 = scmp.ne.s32.totalorder %s751_s3, %s536_s12  ;;  %p540_p3 = scmp.lt.u32.totalorder %s536_s12, %s751_s3 }
  0x28   :  { %p542_p4 = pnand %p540_p3, %p537_p2 }
  0x2a   :  { %545 = shalt.err (!%p542_p4)
}
  0x2b   :  { %s546_s19 = scalar_lea.vmem %s47_s22, 512  ;;  %p551_p6 = scmp.lt.s32.totalorder %s47_s22, %s47_s22 }
  0x2c   :  { %p547_p5 = scmp.ne.s32.totalorder %s47_s22, %s546_s19  ;;  %p552_p7 = scmp.lt.s32.totalorder %s546_s19, %s546_s19 }
  0x2e   :  { %p553_p8 = por %p552_p7, %p551_p6 }
  0x30   :  { %p554_p9 = pnand %p553_p8, %p547_p5 }
  0x32   :  { %557 = shalt.err (!%p554_p9)
}
  0x33   :  { %52 = dma.hbm_to_vmem [thread:$0]  %s751_s3, 512, %s47_s22, [#allocation6], %s611_s15, %s611_s15, %s612_s16  }
  0x34   :  { %s615_s21 = smov [#allocation8]   ;;  %s558_s26 = scalar_lea.hbm %s753_s5, 1024 }
  0x35   :  { %s60_s23 = sshll.u32 %s615_s21, 4  ;;  %p559_p10 = scmp.ne.s32.totalorder %s753_s5, %s558_s26  ;;  %s61_s23 = int_to_ptr.vmem [resolvable:$true] %s60_s23 }
  0x36   :  { %p562_p11 = scmp.lt.u32.totalorder %s558_s26, %s753_s5 }
  0x38   :  { %p564_p12 = pnand %p562_p11, %p559_p10 }
  0x3a   :  { %567 = shalt.err (!%p564_p12)
}
  0x3b   :  { %s568_s28 = scalar_lea.vmem %s61_s23, 1024  ;;  %p573_p0 = scmp.lt.s32.totalorder %s61_s23, %s61_s23 }
  0x3c   :  { %p569_p13 = scmp.ne.s32.totalorder %s61_s23, %s568_s28  ;;  %p574_p1 = scmp.lt.s32.totalorder %s568_s28, %s568_s28 }
  0x3e   :  { %p575_p2 = por %p574_p1, %p573_p0 }
  0x40   :  { %p576_p3 = pnand %p575_p2, %p569_p13 }
  0x42   :  { %579 = shalt.err (!%p576_p3)
}
  0x43   :  { %s616_s3 = smov 256   ;;  %s617_s15 = smov 16  }
  0x44   :  { %66 = dma.hbm_to_vmem [thread:$0]  %s753_s5, 1024, %s61_s23, [#allocation9], %s616_s3, %s616_s3, %s617_s15  }
  0x45   :  { %602 = dma.done.wait [#allocation3], 128  }
  0x46   :  { %603 = vsyncadd [#allocation3], 4294967168 }
  0x47   :  { %604 = dma.done.wait [#allocation6], 768  }
  0x48   :  { %605 = vsyncadd [#allocation6], 4294966528 }
  0x49   :  { %606 = dma.done.wait [#allocation9], 1024  }
  0x4a   :  { %607 = vsyncadd [#allocation9], 4294966272  ;;  %v618_v0 = vmov 0.0|0.0   ;;  %vm619_vm0 = vmmov 0   ;;  %v620_v1 = vmov 0.0   ;;  %v84_v2 = vld [vmem:[#allocation5] sm:$0xff]  ;;  %v273_v44 = vlaneseq }
  0x4b   :  { %453 = vmatprep.subr.bf16.mxu0 %v618_v0  ;;  %439 = vmatprep.mubr.msk.f32.mxu0 %vm619_vm0, %v620_v1  ;;  %v85_v3 = vld [vmem:[#allocation5 + $0x8] sm:$0xff]  ;;  %v83_v5 = vld [vmem:[#allocation2] sm:$0xff]  ;;  %vm93_vm1 = vcmask 130048   ;;  %v169_v6 = vld [vmem:[#allocation7] sm:$0xff]  ;;  %vm180_vm2 = vcmask 261120  }
  0x4c   :  { %456 = vmatprep.subr.bf16.mxu1 %v618_v0  ;;  %450 = vmatprep.mubr.msk.f32.mxu1 %vm619_vm0, %v620_v1  ;;  %v454_v4 = vpack.c.bf16 %v85_v3, %v84_v2  ;;  %v170_v7 = vld [vmem:[#allocation7 + $0x8] sm:$0xff]  ;;  %v171_v9 = vld [vmem:[#allocation7 + $0x10] sm:$0xff]  ;;  %v172_v10 = vld [vmem:[#allocation7 + $0x18] sm:$0xff]  ;;  %v274_v45 = vshrl.u32 %v273_v44, 7 }
  0x4d   :  { %v457_v8 = vpack.c.bf16 %v170_v7, %v169_v6  ;;  %v460_v11 = vpack.c.bf16 %v172_v10, %v171_v9  ;;  %v422_v12 = vld [vmem:[%s750_s2] ss:$0 sm:$0xff]  ;;  %v266_v27 = vld [vmem:[#allocation8 + $0x18] sm:$0xff]  ;;  %v263_v28 = vld [vmem:[#allocation8] sm:$0xff] }
  0x4e   :  { %455 = vmatpush3.bf16.msra.mxu0 %v454_v4  ;;  %v424_v18 = vld [vmem:[%s752_s4] ss:$0 sm:$0xff]  ;;  %v265_v30 = vld [vmem:[#allocation8 + $0x10] sm:$0xff]  ;;  %v270_v32 = vld [vmem:[#allocation8 + $0x38] sm:$0xff]  ;;  %v275_v46 = vsub.s32 0, %v274_v45  ;;  %v279_v48 = vsub.s32 1, %v274_v45 }
  0x4f   :  { %458 = vmatpush3.bf16.msra.mxu1 %v457_v8  ;;  %v264_v26 = vld [vmem:[#allocation8 + $0x8] sm:$0xff]  ;;  %v464_v33 = vpack.c.bf16 %v265_v30, %v263_v28  ;;  %v267_v35 = vld [vmem:[#allocation8 + $0x20] sm:$0xff]  ;;  %v269_v36 = vld [vmem:[#allocation8 + $0x30] sm:$0xff] }
  0x50   :  { %459 = vmatprep.subr.bf16.mxu1 %v618_v0  ;;  %v462_v29 = vpack.c.bf16 %v266_v27, %v264_v26  ;;  %v268_v31 = vld [vmem:[#allocation8 + $0x28] sm:$0xff]  ;;  %v468_v37 = vpack.c.bf16 %v269_v36, %v267_v35 }
  0x51   :  { %440 = vmatmul.mubr.msk.f32.vlgmr.msra.gmra.mrb[0].mxu0 %vm93_vm1, %v83_v5  ;;  %v466_v34 = vpack.c.bf16 %v270_v32, %v268_v31  ;;  %v362_v42 = vld [vmem:[%s755_s7] sm:$0xff] }
  0x52   :  { %350 = vmatprep.mubr.f32.mxu0 %v620_v1  ;;  %463 = vmatprep.subr.bf16.mxu0 %v462_v29  ;;  %v365_v43 = vmul.f32 %v362_v42, %v362_v42  ;;  %v271_v47 = vld [vmem:[%s754_s6] sm:$0x3]  ;;  %s621_s6 = smov [#allocation10]  }
  0x53   :  { %461 = vmatpush3.bf16.msra.mxu1 %v460_v11  ;;  %465 = vmatpush1.bf16.msra.mxu0 %v464_v33  ;;  %v276_v49 = vrot.slane %v271_v47, %v275_v46  ;;  %v280_v50 = vrot.slane %v271_v47, %v279_v48  ;;  %s411_s7 = sshll.u32 %s621_s6, 4  ;;  %s412_s7 = int_to_ptr.vmem [resolvable:$true] %s411_s7 }
  0x54   :  { %467 = vmatprep.subr.bf16.mxu0 %v466_v34  ;;  %s580_s14 = scalar_lea.vmem %s412_s7, 640  ;;  %p585_p5 = scmp.lt.s32.totalorder %s412_s7, %s412_s7 }
  0x55   :  { %p581_p4 = scmp.ne.s32.totalorder %s412_s7, %s580_s14  ;;  %p586_p6 = scmp.lt.s32.totalorder %s580_s14, %s580_s14 }
  0x57   :  { %469 = vmatpush1.bf16.msra.mxu0 %v468_v37  ;;  %p587_p7 = por %p586_p6, %p585_p5 }
  0x59   :  { %p588_p8 = pnand %p587_p7, %p581_p4 }
 0x124   :  { %v163_v13 = vpop.f32.mrb[0].mxu0 }
 0x125   :  { %v164_v14 = vadd.f32 %v422_v12, %v163_v13  ;;  %v441_v15 = vpop.f32.mrb[1].mxu0 }
 0x127   :  { %v167_v16 = vmul.f32 0.01, %v164_v14 }
 0x129   :  { %v168_v17 = vmax.f32 %v164_v14, %v167_v16 }
 0x12b   :  { %451 = vmatmul.mubr.msk.f32.vlgmr.msra.gmra.mrb[0].mxu1 %vm180_vm2, %v168_v17 }
 0x1fe   :  { %v250_v19 = vpop.f32.mrb[0].mxu1 }
 0x1ff   :  { %v251_v20 = vadd.f32 %v424_v18, %v250_v19  ;;  %v452_v21 = vpop.f32.mrb[1].mxu1 }
 0x201   :  { %v254_v22 = vmul.f32 0.01, %v251_v20 }
 0x203   :  { %v255_v23 = vmax.f32 %v251_v20, %v254_v22 }
 0x205   :  { %v256_v24 = vmul.f32 %v255_v23, %v255_v23 }
 0x207   :  { %v257_v25 = vsel %vm180_vm2, %v256_v24, 0.0 }
 0x208   :  { %258 = vadd.xlane.f32.xlu0 %v257_v25 }
 0x20c   :  { %366 = vadd.xlane.f32.xlu0 %v365_v43 }
 0x295   :  { %v259_v38 = vpop.xlane.xlu0 %258 }
 0x296   :  { %v260_v39 = vadd.f32 1e-12, %v259_v38 }
 0x298   :  { %482 = vrsqrt.f32 %v260_v39 }
 0x299   :  { %v367_v19 = vpop.xlane.xlu0 %366 }
 0x2a2   :  { %v483_v40 = vpop.eup %482 }
 0x2a3   :  { %v262_v41 = vmul.f32 %v483_v40, %v255_v23 }
 0x2a5   :  { %426 = vmatmul.mubr.msk.f32.vlgmr.msra.gmra.mrb[2].mxu0 %vm180_vm2, %v262_v41 }
 0x378   :  { %v352_v51 = vpop.f32.mrb[2].mxu0 }
 0x379   :  { %v353_v52 = vadd.f32 %v352_v51, %v276_v49  ;;  %v354_v53 = vpop.f32.mrb[3].mxu0 }
 0x37a   :  { %v355_v54 = vadd.f32 %v354_v53, %v280_v50 }
 0x37b   :  { %401 = vst [vmem:[#allocation10 + $0x8] sm:$0xff] %v353_v52 }
 0x37c   :  { %v357_v55 = vmax.f32 %v355_v54, -20.0 }
 0x37e   :  { %v358_v56 = vmin.f32 %v357_v55, 2.0 }
 0x380   :  { %v359_v57 = vmul.f32 0.5, %v358_v56  ;;  %402 = vst [vmem:[#allocation10 + $0x10] sm:$0xff] %v358_v56  ;;  %368 = vadd.xlane.f32.xlu1 %v358_v56 }
 0x382   :  { %v360_v58 = vmul.f32 1.442695, %v359_v57 }
 0x384   :  { %484 = vpow2.f32 %v360_v58 }
 0x38e   :  { %v485_v59 = vpop.eup %484 }
 0x38f   :  { %v363_v60 = vmul.f32 %v485_v59, %v362_v42 }
 0x391   :  { %v364_v61 = vadd.f32 %v363_v60, %v353_v52 }
 0x393   :  { %486 = vtanh.f32 %v364_v61  ;;  %403 = vst [vmem:[#allocation10 + $0x18] sm:$0xff] %v364_v61  ;;  %v374_v62 = vmul.f32 -2.0, %v364_v61  ;;  %v373_v15 = vsub.f32 0.6931472, %v364_v61 }
 0x395   :  { %v376_v63 = vsub.f32 0.0, %v374_v62  ;;  %v375_v12 = vmax.f32 %v374_v62, 0.0 }
 0x397   :  { %v379_v0 = vand.u32 2147483647, %v376_v63  ;;  %vm377_vm4 = vcmp.ne.f32.partialorder %v376_v63, %v376_v63 }
 0x399   :  { %v380_v1 = vsub.f32 0.0, %v379_v0 }
 0x39b   :  { %v381_v2 = vmul.f32 1.442695, %v380_v1 }
 0x39d   :  { %v487_v3 = vpop.eup %486  ;;  %488 = vpow2.f32 %v381_v2 }
 0x39e   :  { %400 = vst [vmem:[#allocation10] sm:$0xff] %v487_v3 }
 0x3a7   :  { %v489_v4 = vpop.eup %488 }
 0x3a8   :  { %v383_v5 = vadd.f32 1.0, %v489_v4  ;;  %v386_v6 = vmul.f32 -0.5, %v489_v4  ;;  %v389_v8 = vand.u32 2147483647, %v489_v4 }
 0x3aa   :  { %490 = vlog2.f32 %v383_v5  ;;  %v387_v7 = vadd.f32 1.0, %v386_v6  ;;  %vm390_vm3 = vcmp.lt.f32.partialorder %v389_v8, 0.0004427343 }
 0x3ac   :  { %v388_v11 = vmul.f32 %v489_v4, %v387_v7 }
 0x3b4   :  { %v491_v9 = vpop.eup %490 }
 0x3b5   :  { %v385_v10 = vmul.f32 0.6931472, %v491_v9 }
 0x3b7   :  { %v391_v13 = vsel %vm390_vm3, %v388_v11, %v385_v10 }
 0x3b8   :  { %v392_v14 = vadd.f32 %v391_v13, %v375_v12 }
 0x3ba   :  { %v393_v16 = vsel %vm377_vm4, %v374_v62, %v392_v14 }
 0x3bb   :  { %v394_v17 = vsub.f32 %v373_v15, %v393_v16 }
 0x3bd   :  { %v395_v18 = vmul.f32 2.0, %v394_v17 }
 0x3bf   :  { %396 = vadd.xlane.f32.xlu1 %v395_v18 }
 0x40d   :  { %v369_v20 = vpop.xlane.xlu1 %368 }
 0x40e   :  { %v370_v21 = vadd.f32 %v369_v20, %v367_v19 }
 0x410   :  { %v371_v22 = vadd.f32 7.351508, %v370_v21 }
 0x412   :  { %v372_v23 = vmul.f32 -0.5, %v371_v22 }
 0x44c   :  { %v397_v24 = vpop.xlane.xlu1 %396 }
 0x44d   :  { %v398_v25 = vsub.f32 %v372_v23, %v397_v24 }
 0x44f   :  { %404 = vst [vmem:[#allocation10 + $0x20] sm:$0xff] %v398_v25 }
 0x450   :  { %591 = shalt.err (!%p588_p8)
}
 0x451   :  { %s592_s19 = scalar_lea.hbm %s756_s8, 640 }
 0x452   :  { %p593_p9 = scmp.ne.s32.totalorder %s756_s8, %s592_s19  ;;  %p596_p10 = scmp.lt.u32.totalorder %s592_s19, %s756_s8 }
 0x454   :  { %p598_p11 = pnand %p596_p10, %p593_p9 }
 0x456   :  { %601 = shalt.err (!%p598_p11)
}
 0x457   :  { %414 = dma.vmem_to_hbm [thread:$0]  %s412_s7, 640, %s756_s8, [#allocation4]  }
 0x458   :  { %608 = dma.done.wait [#allocation4], 640  }
 0x459   :  { %609 = vsyncadd [#allocation4], 4294966656 }
 0x45a   :  { %418 = vsyncpa [#allocation3], 1 }
 0x45b   :  { %419 = vsyncpa [#allocation6], 1 }
 0x45c   :  { %420 = vsyncpa [#allocation9], 1 }
 0x45d   :  { %421 = vsyncpa [#allocation4], 1 }

</bundles_post_ra>
